<compile_context>
chip_gen: v7x
topology: tpu7x:2x2x1
jax: 0.10.0
libtpu: 0.0.40
codegen_flags: <defaults>
</compile_context>

<pallas_src>
import math
import functools

import jax
import jax.numpy as jnp
from jax import lax
from jax.experimental import pallas as pl
from jax.experimental.pallas import tpu as pltpu

_VMEM_LIMIT_BYTES = 48 * 1024 * 1024  # above v6e's 32 MiB default, below v7x's 64 MiB physical


# ---------------------------------------------------------------------------
# Kernel 1: tiled fused linear  y = x @ W + b  (Q-proj, KV-proj, out-proj)
# ---------------------------------------------------------------------------
def _linear_kernel(x_ref, w_ref, b_ref, o_ref, acc_ref):
    @pl.when(pl.program_id(2) == 0)
    def _init():
        acc_ref[...] = jnp.zeros_like(acc_ref)

    # bf16 MXU inputs, f32 accumulation (x cast is a no-op if already bf16).
    acc_ref[...] += jnp.dot(
        x_ref[...].astype(jnp.bfloat16), w_ref[...],
        preferred_element_type=jnp.float32)

    @pl.when(pl.program_id(2) == pl.num_programs(2) - 1)
    def _finalize():
        o_ref[...] = (acc_ref[...] + b_ref[...]).astype(o_ref.dtype)


def _pick_tile(dim, target):
    """Largest multiple of 128 <= target that divides dim; else the full dim."""
    if dim <= target:
        return dim
    t = target
    while t >= 128:
        if dim % t == 0:
            return t
        t -= 128
    return dim


def pallas_linear(x, w, b, *, out_dtype, tm=256, tn=256, tk=512):
    """x: [M, K] (f32 or bf16), w: [K, N] bf16, b: [1, N] f32 -> [M, N] out_dtype."""
    m, k = x.shape
    n = w.shape[1]
    bm, bn, bk = _pick_tile(m, tm), _pick_tile(n, tn), _pick_tile(k, tk)
    grid = (m // bm, n // bn, k // bk)
    return pl.pallas_call(
        _linear_kernel,
        out_shape=jax.ShapeDtypeStruct((m, n), out_dtype),
        grid_spec=pltpu.PrefetchScalarGridSpec(
            num_scalar_prefetch=0,
            grid=grid,
            in_specs=[
                pl.BlockSpec((bm, bk), lambda i, j, kk: (i, kk)),
                pl.BlockSpec((bk, bn), lambda i, j, kk: (kk, j)),
                pl.BlockSpec((1, bn), lambda i, j, kk: (0, j)),
            ],
            out_specs=pl.BlockSpec((bm, bn), lambda i, j, kk: (i, j)),
            scratch_shapes=[pltpu.VMEM((bm, bn), jnp.float32)],
        ),
        compiler_params=pltpu.CompilerParams(
            dimension_semantics=("parallel", "parallel", "arbitrary"),
            vmem_limit_bytes=_VMEM_LIMIT_BYTES,
        ),
    )(x, w, b)


# ---------------------------------------------------------------------------
# Kernel 2: cross-attention core, one (batch, head-group) per grid step
#   scores = (Q/sqrt(dh)) K^T ; masked (binary mask -> -10000) ; softmax ; ctx = P V
# ---------------------------------------------------------------------------
def _attn_kernel(q_ref, kv_ref, m_ref, o_ref, *, head_group, head_dim):
    scale = 1.0 / math.sqrt(head_dim)
    gw = head_group * head_dim

    mask = m_ref[0, 0]                      # [Sq, Sk]
    qblk = q_ref[0] * scale                 # fold 1/sqrt(dh) into Q  -> [Sq, gw] bf16

    for h in range(head_group):             # short static loop over heads in the group
        lo = h * head_dim
        hi = lo + head_dim
        q_h = qblk[:, lo:hi]                # [Sq, dh]
        k_h = kv_ref[0, :, lo:hi]           # [Sk, dh]   (K plane of this group)
        v_h = kv_ref[0, :, gw + lo:gw + hi]  # [Sk, dh]  (V plane of this group)

        # Q K^T without materializing a transpose of K (contract last dims).
        s = lax.dot_general(q_h, k_h, (((1,), (1,)), ((), ())),
                            preferred_element_type=jnp.float32)   # [Sq, Sk] f32

        # Binary-mask semantics of the reference: mask==1 -> score, mask==0 -> -10000.
        s = jnp.where(mask > 0, s, -10000.0)

        # Numerically-stable softmax along Sk.
        s = s - jnp.max(s, axis=-1, keepdims=True)
        p = jnp.exp(s)
        p = p * pl.reciprocal(jnp.sum(p, axis=-1, keepdims=True), approx=True)

        ctx = jnp.dot(p.astype(kv_ref.dtype), v_h,
                      preferred_element_type=jnp.float32)          # [Sq, dh]
        o_ref[0, :, lo:hi] = ctx.astype(o_ref.dtype)


def _pick_head_group(num_heads, head_dim):
    """Smallest divisor g of num_heads with g*head_dim a multiple of 128 (lane-dense
    blocks); otherwise all heads (block then spans the full hidden dim)."""
    for g in range(1, num_heads):
        if num_heads % g == 0 and (g * head_dim) % 128 == 0:
            return g
    return num_heads


def pallas_cross_attention(q3, kv3, mask, *, num_heads, head_dim, head_group):
    """q3: [B, Sq, H] bf16, kv3: [B, Sk, 2H] bf16 (group-interleaved K|V columns),
    mask: [B, 1, Sq, Sk] -> ctx [B, Sq, H] bf16 (heads in original order)."""
    b, sq, h = q3.shape
    sk = kv3.shape[1]
    gw = head_group * head_dim
    n_groups = num_heads // head_group

    kern = functools.partial(_attn_kernel, head_group=head_group, head_dim=head_dim)
    return pl.pallas_call(
        kern,
        out_shape=jax.ShapeDtypeStruct((b, sq, h), q3.dtype),
        grid_spec=pltpu.PrefetchScalarGridSpec(
            num_scalar_prefetch=0,
            grid=(b, n_groups),                       # head axis innermost (mask reuse)
            in_specs=[
                pl.BlockSpec((1, sq, gw), lambda bi, hi: (bi, 0, hi)),
                pl.BlockSpec((1, sk, 2 * gw), lambda bi, hi: (bi, 0, hi)),
                pl.BlockSpec((1, 1, sq, sk), lambda bi, hi: (bi, 0, 0, 0)),
            ],
            out_specs=pl.BlockSpec((1, sq, gw), lambda bi, hi: (bi, 0, hi)),
        ),
        compiler_params=pltpu.CompilerParams(
            dimension_semantics=("parallel", "parallel"),
            vmem_limit_bytes=_VMEM_LIMIT_BYTES,
        ),
    )(q3, kv3, mask)


# ---------------------------------------------------------------------------
# Module wrapper (world_size = 1  =>  "per-partition" == full sizes)
# ---------------------------------------------------------------------------
class ParallelCrossAttentionPallas:
    def __init__(self, hidden_size, num_attention_heads, key):
        self.hidden_size = hidden_size
        self.num_heads = num_attention_heads
        self.head_dim = hidden_size // num_attention_heads
        self.head_group = _pick_head_group(self.num_heads, self.head_dim)

        H = hidden_size
        k1, k2, k3 = jax.random.split(key, 3)
        std = 0.02
        # master (f32) parameters — mirror the torch module's Linear layers
        self.wq = (jax.random.normal(k1, (H, H)) * std).astype(jnp.float32)
        self.bq = jnp.zeros((1, H), jnp.float32)
        self.wkv = (jax.random.normal(k2, (H, 2 * H)) * std).astype(jnp.float32)
        self.bkv = jnp.zeros((1, 2 * H), jnp.float32)
        self.wd = (jax.random.normal(k3, (H, H)) * std).astype(jnp.float32)
        self.bd = jnp.zeros((1, H), jnp.float32)

        # Kernel-side copies: bf16 weights (one-time cast).  KV columns permuted so
        # each head-group's K and V blocks are contiguous in the projection output
        # (identity permutation when head_group == num_heads).
        g, dh = self.head_group, self.head_dim
        gw = g * dh
        perm = []
        for gi in range(self.num_heads // g):
            perm.extend(range(gi * gw, (gi + 1) * gw))           # K heads of group gi
            perm.extend(range(H + gi * gw, H + (gi + 1) * gw))   # V heads of group gi
        perm = jnp.asarray(perm, jnp.int32)
        self.wq_k = self.wq.astype(jnp.bfloat16)
        self.wkv_k = self.wkv[:, perm].astype(jnp.bfloat16)
        self.bkv_k = self.bkv[:, perm]
        self.wd_k = self.wd.astype(jnp.bfloat16)

    def __call__(self, hidden_states, encoder_states, cross_mask):
        B, Sq, H = hidden_states.shape
        Sk = encoder_states.shape[1]

        # ---- projections (tiled Pallas matmuls, bf16 MXU, f32 accumulate) ----
        q2d = pallas_linear(hidden_states.reshape(B * Sq, H), self.wq_k, self.bq,
                            out_dtype=jnp.bfloat16)
        kv2d = pallas_linear(encoder_states.reshape(B * Sk, H), self.wkv_k, self.bkv_k,
                             out_dtype=jnp.bfloat16)

        # Free reshapes only — head layout is handled inside the attention kernel.
        q3 = q2d.reshape(B, Sq, H)
        kv3 = kv2d.reshape(B, Sk, 2 * H)

        # ---- attention core (Pallas kernel) -> context already laid out as [B,Sq,H] ----
        ctx = pallas_cross_attention(q3, kv3, cross_mask,
                                     num_heads=self.num_heads,
                                     head_dim=self.head_dim,
                                     head_group=self.head_group)

        # ---- output projection ----
        out = pallas_linear(ctx.reshape(B * Sq, H), self.wd_k, self.bd,
                            out_dtype=jnp.float32)
        return out.reshape(B, Sq, H)


if __name__ == "__main__":
    B, Sq, Sk, H, NH = 2, 8, 8, 32, 4

    key = jax.random.PRNGKey(0)
    k_hid, k_enc, k_mask, k_param = jax.random.split(key, 4)

    hidden_states = jax.random.normal(k_hid, (B, Sq, H), dtype=jnp.float32)
    encoder_states = jax.random.normal(k_enc, (B, Sk, H), dtype=jnp.float32)
    # binary cross-attention mask, broadcast over heads
    cross_mask = (jax.random.uniform(k_mask, (B, 1, Sq, Sk)) > 0.2).astype(jnp.float32)

    module = ParallelCrossAttentionPallas(H, NH, k_param)
    out = module(hidden_states, encoder_states, cross_mask)
    out = jax.block_until_ready(out)

    assert out.shape == (B, Sq, H)
    assert jnp.all(jnp.isfinite(out))
    print("KERNEL_OK")
</pallas_src>

<mosaic_0001>
module attributes {stable_mosaic.version = 11 : i64} {
  func.func @_linear_kernel(%arg0: i32, %arg1: i32, %arg2: i32, %arg3: memref<16x32xf32, #tpu.memory_space<vmem>>, %arg4: memref<32x32xbf16, #tpu.memory_space<vmem>>, %arg5: memref<1x32xf32, #tpu.memory_space<vmem>>, %arg6: memref<16x32xbf16, #tpu.memory_space<vmem>>, %arg7: memref<16x32xf32, #tpu.memory_space<vmem>>) attributes {dimension_semantics = [#tpu.dimension_semantics<parallel>, #tpu.dimension_semantics<parallel>, #tpu.dimension_semantics<arbitrary>], iteration_bounds = array<i64: 1, 1, 1>, scalar_prefetch = 0 : i64, scratch_operands = 1 : i64, tpu.core_type = #tpu.core_type<tc>, window_params = [{transform_indices = @transform_0, window_bounds = array<i64: 16, 32>}, {transform_indices = @transform_1, window_bounds = array<i64: 32, 32>}, {transform_indices = @transform_2, window_bounds = array<i64: 1, 32>}, {transform_indices = @transform_3, window_bounds = array<i64: 16, 32>}]} {
    %c0_i32 = arith.constant 0 : i32
    %0 = arith.cmpi eq, %arg2, %c0_i32 : i32
    %1 = arith.extui %0 : i1 to i32
    %c0_i32_0 = arith.constant 0 : i32
    %2 = arith.cmpi ne, %1, %c0_i32_0 : i32
    scf.if %2 {
      %cst_10 = arith.constant 0.000000e+00 : f32
      %13 = vector.broadcast %cst_10 : f32 to vector<16x32xf32>
      %c0_11 = arith.constant 0 : index
      %c0_12 = arith.constant 0 : index
      %14 = vector.load %arg7[%c0_11, %c0_12] : memref<16x32xf32, #tpu.memory_space<vmem>>, vector<16x32xf32>
      tpu.vector_store %arg7[%c0_11, %c0_12], %13 {strides = array<i32>} : memref<16x32xf32, #tpu.memory_space<vmem>>, vector<16x32xf32>,
    } else {
    }
    %c0 = arith.constant 0 : index
    %c0_1 = arith.constant 0 : index
    %3 = vector.load %arg7[%c0, %c0_1] : memref<16x32xf32, #tpu.memory_space<vmem>>, vector<16x32xf32>
    %c0_2 = arith.constant 0 : index
    %c0_3 = arith.constant 0 : index
    %4 = vector.load %arg3[%c0_2, %c0_3] : memref<16x32xf32, #tpu.memory_space<vmem>>, vector<16x32xf32>
    %5 = arith.truncf %4 : vector<16x32xf32> to vector<16x32xbf16>
    %c0_4 = arith.constant 0 : index
    %c0_5 = arith.constant 0 : index
    %6 = vector.load %arg4[%c0_4, %c0_5] : memref<32x32xbf16, #tpu.memory_space<vmem>>, vector<32x32xbf16>
    %cst = arith.constant dense<0.000000e+00> : vector<16x32xf32>
    %7 = tpu.matmul %5, %6, %cst {dimension_numbers = #tpu.dot_dimension_numbers<[1], [0], [0], [1], [0, 0, 1, 1], [], []>} : vector<16x32xbf16>, vector<32x32xbf16>, vector<16x32xf32> -> vector<16x32xf32>
    %8 = arith.addf %3, %7 : vector<16x32xf32>
    %c0_6 = arith.constant 0 : index
    %c0_7 = arith.constant 0 : index
    %9 = vector.load %arg7[%c0_6, %c0_7] : memref<16x32xf32, #tpu.memory_space<vmem>>, vector<16x32xf32>
    tpu.vector_store %arg7[%c0_6, %c0_7], %8 {strides = array<i32>} : memref<16x32xf32, #tpu.memory_space<vmem>>, vector<16x32xf32>,
    %c0_i32_8 = arith.constant 0 : i32
    %10 = arith.cmpi eq, %arg2, %c0_i32_8 : i32
    %11 = arith.extui %10 : i1 to i32
    %c0_i32_9 = arith.constant 0 : i32
    %12 = arith.cmpi ne, %11, %c0_i32_9 : i32
    scf.if %12 {
      %c0_10 = arith.constant 0 : index
      %c0_11 = arith.constant 0 : index
      %13 = vector.load %arg7[%c0_10, %c0_11] : memref<16x32xf32, #tpu.memory_space<vmem>>, vector<16x32xf32>
      %c0_12 = arith.constant 0 : index
      %c0_13 = arith.constant 0 : index
      %14 = vector.load %arg5[%c0_12, %c0_13] : memref<1x32xf32, #tpu.memory_space<vmem>>, vector<1x32xf32>
      %15 = vector.broadcast %14 : vector<1x32xf32> to vector<16x32xf32>
      %16 = arith.addf %13, %15 : vector<16x32xf32>
      %17 = arith.truncf %16 : vector<16x32xf32> to vector<16x32xbf16>
      %c0_14 = arith.constant 0 : index
      %c0_15 = arith.constant 0 : index
      %18 = vector.load %arg6[%c0_14, %c0_15] : memref<16x32xbf16, #tpu.memory_space<vmem>>, vector<16x32xbf16>
      tpu.vector_store %arg6[%c0_14, %c0_15], %17 {strides = array<i32>} : memref<16x32xbf16, #tpu.memory_space<vmem>>, vector<16x32xbf16>,
    } else {
    }
    return
  }
  func.func @transform_0(%arg0: i32, %arg1: i32, %arg2: i32) -> (i32, i32) {
    %c0_i32 = arith.constant 0 : i32
    return %arg0, %arg2 : i32, i32
  }
  func.func @transform_1(%arg0: i32, %arg1: i32, %arg2: i32) -> (i32, i32) {
    %c0_i32 = arith.constant 0 : i32
    return %arg2, %arg1 : i32, i32
  }
  func.func @transform_2(%arg0: i32, %arg1: i32, %arg2: i32) -> (i32, i32) {
    %c0_i32 = arith.constant 0 : i32
    %c0_i32_0 = arith.constant 0 : i32
    return %c0_i32, %arg1 : i32, i32
  }
  func.func @transform_3(%arg0: i32, %arg1: i32, %arg2: i32) -> (i32, i32) {
    %c0_i32 = arith.constant 0 : i32
    return %arg0, %arg1 : i32, i32
  }
}

</mosaic_0001>

<bundles_post_ra>
// kernel: tpu_custom_call.1
= control target key start
LH: loop header
LB: loop body
LE: loop exit
PB: predicated region body
PF: predicated region fallthrough
CT: control target
= control target key end

     0   :  { %8 = vsyncpa [#allocation4], 0  ;;  %s345_s0 = inlined_call_operand.hbm [shape: f32[16,32], index: 0, kind: input, shape index: {}]   ;;  %s346_s1 = inlined_call_operand.hbm [shape: bf16[32,32], index: 1, kind: input, shape index: {}]   ;;  %s347_s2 = inlined_call_operand.vmem [shape: f32[1,32], index: 2, kind: input, shape index: {}]   ;;  %s348_s3 = inlined_call_operand.hbm [shape: bf16[16,32], index: 3, kind: output, shape index: {}]  }
   0x1   :  { %9 = vsyncpa [#allocation7], 0 }
   0x2   :  { %10 = vsyncpa [#allocation5], 0  ;;  %s266_s12 = smov [#allocation3]   ;;  %s194_s16 = scalar_lea.hbm %s345_s0, 256 }
   0x3   :  { %s16_s13 = sshll.u32 %s266_s12, 4  ;;  %p195_p0 = scmp.ne.s32.totalorder %s345_s0, %s194_s16  ;;  %s17_s13 = int_to_ptr.vmem [resolvable:$true] %s16_s13 }
   0x4   :  { %p198_p1 = scmp.lt.u32.totalorder %s194_s16, %s345_s0 }
   0x6   :  { %p200_p2 = pnand %p198_p1, %p195_p0 }
   0x8   :  { %203 = shalt.err (!%p200_p2)
}
   0x9   :  { %s204_s21 = scalar_lea.vmem %s17_s13, 256  ;;  %p209_p4 = scmp.lt.s32.totalorder %s17_s13, %s17_s13 }
   0xa   :  { %p205_p3 = scmp.ne.s32.totalorder %s17_s13, %s204_s21  ;;  %p210_p5 = scmp.lt.s32.totalorder %s204_s21, %s204_s21 }
   0xc   :  { %p211_p6 = por %p210_p5, %p209_p4 }
   0xe   :  { %p212_p7 = pnand %p211_p6, %p205_p3 }
  0x10   :  { %215 = shalt.err (!%p212_p7)
}
  0x11   :  { %s267_s22 = smov 128   ;;  %s268_s23 = smov 8  }
  0x12   :  { %22 = dma.hbm_to_vmem [thread:$0]  %s345_s0, 256, %s17_s13, [#allocation4], %s267_s22, %s267_s22, %s268_s23  }
  0x13   :  { %s269_s26 = smov [#allocation6]   ;;  %s216_s30 = scalar_lea.hbm %s346_s1, 256 }
  0x14   :  { %s28_s27 = sshll.u32 %s269_s26, 4  ;;  %p217_p8 = scmp.ne.s32.totalorder %s346_s1, %s216_s30  ;;  %s29_s27 = int_to_ptr.vmem [resolvable:$true] %s28_s27 }
  0x15   :  { %p220_p9 = scmp.lt.u32.totalorder %s216_s30, %s346_s1 }
  0x17   :  { %p222_p10 = pnand %p220_p9, %p217_p8 }
  0x19   :  { %225 = shalt.err (!%p222_p10)
}
  0x1a   :  { %s226_s8 = scalar_lea.vmem %s29_s27, 256  ;;  %p231_p12 = scmp.lt.s32.totalorder %s29_s27, %s29_s27 }
  0x1b   :  { %p227_p11 = scmp.ne.s32.totalorder %s29_s27, %s226_s8  ;;  %p232_p13 = scmp.lt.s32.totalorder %s226_s8, %s226_s8 }
  0x1d   :  { %p233_p0 = por %p232_p13, %p231_p12 }
  0x1f   :  { %p234_p1 = pnand %p233_p0, %p227_p11 }
  0x21   :  { %237 = shalt.err (!%p234_p1)
}
  0x22   :  { %s270_s0 = smov 64   ;;  %s271_s9 = smov 4  }
  0x23   :  { %34 = dma.hbm_to_vmem [thread:$0]  %s346_s1, 256, %s29_s27, [#allocation7], %s270_s0, %s270_s0, %s271_s9  }
  0x24   :  { %260 = dma.done.wait [#allocation4], 256  }
  0x25   :  { %261 = vsyncadd [#allocation4], 4294967040 }
  0x26   :  { %262 = dma.done.wait [#allocation7], 256  }
  0x27   :  { %263 = vsyncadd [#allocation7], 4294967040  ;;  %vm48_vm0 = vcmask 261120   ;;  %v272_v0 = vmov 0.0   ;;  %vm273_vm1 = vmmov 0   ;;  %v192_v1 = vld [vmem:[#allocation6] sm:$0xff]  }
  0x28   :  { %175 = vmatprep.subr.bf16.mxu0 %v272_v0  ;;  %179 = vmatprep.mubr.msk.bf16.mxu0 %vm273_vm1, %v272_v0  ;;  %49 = vst.msk [vmem:[#allocation2] sm:$0xff] %vm48_vm0, %v272_v0  ;;  %50 = vst.msk [vmem:[#allocation2 + $0x8] sm:$0xff] %vm48_vm0, %v272_v0  ;;  %v193_v2 = vld [vmem:[#allocation6 + $0x8] sm:$0xff]   ;;  %v53_v3 = vld [vmem:[#allocation3] sm:$0xff]  ;;  %vm143_vm2 = vcmask 257024   ;;  %s274_s13 = smov [#allocation8]  }
  0x29   :  { %176 = vmatpush3.bf16.msra.mxu0 %v192_v1  ;;  %v54_v4 = vld [vmem:[#allocation3 + $0x8] sm:$0xff]  ;;  %v167_v14 = vld [vmem:[%s347_s2] ss:$0 sm:$0xff]  ;;  %s151_s14 = sshll.u32 %s274_s13, 4  ;;  %s152_s14 = int_to_ptr.vmem [resolvable:$true] %s151_s14 }
  0x2a   :  { %177 = vmatprep.subr.bf16.mxu0 %v272_v0  ;;  %v55_v5 = vpack.c.bf16 %v54_v4, %v53_v3  ;;  %s238_s15 = scalar_lea.vmem %s152_s14, 128  ;;  %p243_p3 = scmp.lt.s32.totalorder %s152_s14, %s152_s14 }
  0x2b   :  { %p239_p2 = scmp.ne.s32.totalorder %s152_s14, %s238_s15  ;;  %p244_p4 = scmp.lt.s32.totalorder %s238_s15, %s238_s15 }
  0x2d   :  { %178 = vmatpush3.bf16.msra.mxu0 %v193_v2  ;;  %p245_p5 = por %p244_p4, %p243_p3 }
  0x2f   :  { %v51_v6 = vld [vmem:[#allocation2] sm:$0xff]  ;;  %v52_v8 = vld [vmem:[#allocation2 + $0x8] sm:$0xff]  ;;  %p246_p6 = pnand %p245_p5, %p239_p2 }
  0x30   :  { %180 = vmatmul.mubr.msk.bf16.vlgmr.msra.gmra.mrb[0].mxu0 %vm48_vm0, %v55_v5 }
 0x103   :  { %v110_v7 = vpop.f32.mrb[0].mxu0 }
 0x104   :  { %v117_v9 = vadd.f32 %v110_v7, %v51_v6  ;;  %v181_v10 = vpop.f32.mrb[1].mxu0 }
 0x105   :  { %v113_v11 = vpop.f32.mrb[2].mxu0 }
 0x106   :  { %119 = vst.msk [vmem:[#allocation2] sm:$0xff] %vm48_vm0, %v117_v9  ;;  %v118_v12 = vadd.f32 %v113_v11, %v52_v8  ;;  %v182_v13 = vpop.f32.mrb[3].mxu0 }
 0x108   :  { %120 = vst.msk [vmem:[#allocation2 + $0x8] sm:$0xff] %vm48_vm0, %v118_v12 }
 0x10d   :  { %v124_v15 = vld [vmem:[#allocation2] sm:$0xff] }
 0x10e   :  { %v133_v16 = vadd.f32 %v167_v14, %v124_v15 }
 0x10f   :  { %v125_v17 = vld [vmem:[#allocation2 + $0x8] sm:$0xff] }
 0x110   :  { %v134_v18 = vadd.f32 %v167_v14, %v125_v17  ;;  %v170_v19 = vpack.c.bf16 %v133_v16, %v133_v16 }
 0x112   :  { %v171_v20 = vpack.c.bf16 %v134_v18, %v134_v18  ;;  %144 = vst.msk [vmem:[#allocation8] sm:$0xf] %vm143_vm2, %v170_v19 }
 0x114   :  { %145 = vst.msk [vmem:[#allocation8 + $0x4] sm:$0xf] %vm143_vm2, %v171_v20 }
 0x115   :  { %249 = shalt.err (!%p246_p6)
}
 0x116   :  { %s250_s17 = scalar_lea.hbm %s348_s3, 128 }
 0x117   :  { %p251_p7 = scmp.ne.s32.totalorder %s348_s3, %s250_s17  ;;  %p254_p8 = scmp.lt.u32.totalorder %s250_s17, %s348_s3 }
 0x119   :  { %p256_p9 = pnand %p254_p8, %p251_p7 }
 0x11b   :  { %259 = shalt.err (!%p256_p9)
}
 0x11c   :  { %157 = dma.vmem_to_hbm [thread:$0]  %s152_s14, 128, %s348_s3, [#allocation5], %s270_s0, %s270_s0, %s271_s9  }
 0x11d   :  { %264 = dma.done.wait [#allocation5], 128  }
 0x11e   :  { %265 = vsyncadd [#allocation5], 4294967168 }
 0x11f   :  { %161 = vsyncpa [#allocation4], 1 }
 0x120   :  { %162 = vsyncpa [#allocation7], 1 }
 0x121   :  { %163 = vsyncpa [#allocation5], 1 }

</bundles_post_ra>
